<compile_context>
chip_gen: v5e
topology: v5e:2x2
jax: 0.10.0
libtpu: 0.0.40
codegen_flags: <defaults>
</compile_context>

<pallas_src>
import functools

import jax
import jax.numpy as jnp
from jax.experimental import pallas as pl
from jax.experimental.pallas import tpu as pltpu


def _round_up(x, m):
    return (x + m - 1) // m * m


_ACTIVATIONS = {
    "tanh": jnp.tanh,
    "relu": lambda v: jnp.maximum(v, 0.0),
    "sigmoid": jax.nn.sigmoid,
}


def _mlp_kernel(x_ref, w1_ref, b1_ref, w2_ref, b2_ref, o_ref, h_ref, *, act_fn):
    # Layer 1: (tile_b, D_in) @ (D_in, H1) on the MXU, f32 accumulation; bias
    # add on the VPU and activation on the EUP, all in f32.
    h = jnp.dot(x_ref[...], w1_ref[...], preferred_element_type=jnp.float32)
    h = act_fn(h + b1_ref[...])
    # Stage the intermediate through VMEM in the compute dtype: bounds vreg
    # pressure for large tiles and feeds the second matmul (possibly bf16).
    h_ref[...] = h.astype(h_ref.dtype)
    # Layer 2.
    y = jnp.dot(h_ref[...], w2_ref[...], preferred_element_type=jnp.float32)
    y = act_fn(y + b2_ref[...])
    o_ref[...] = y.astype(o_ref.dtype)


def mlp_forward(x, w1, b1, w2, b2, *, activation="tanh", tile_b=256,
                compute_dtype=None):
    """Fused 2-layer MLP.

    x:(B, D_in), w1:(D_in, H1), b1:(H1,), w2:(H1, H2), b2:(H2,).
    Returns act(act(x @ w1 + b1) @ w2 + b2), shape (B, H2).
    """
    B, D_in = x.shape
    H1 = w1.shape[1]
    H2 = w2.shape[1]
    assert w1.shape[0] == D_in and w2.shape[0] == H1
    assert b1.shape == (H1,) and b2.shape == (H2,)

    out_dtype = x.dtype
    cdt = jnp.dtype(compute_dtype) if compute_dtype is not None else jnp.dtype(x.dtype)
    act_fn = _ACTIVATIONS[activation]

    # Sublane granularity: 8 rows for 32-bit, 16 for 16-bit packed dtypes.
    sub = 16 if cdt.itemsize == 2 else 8

    # Lane-dense padded feature dims (multiples of 128).
    D_in_p = _round_up(D_in, 128)
    H1_p = _round_up(H1, 128)
    H2_p = _round_up(H2, 128)

    # Batch tile: as large as requested but never (much) larger than the batch.
    tb = _round_up(max(sub, min(tile_b, _round_up(B, sub))), sub)
    B_p = _round_up(B, tb)

    # Pad + cast operands outside the kernel. Zero padding contributes exactly
    # 0 to every dot product (padded weight rows are zero); padded output
    # rows/cols are sliced off at the end.
    def pad2(a, r, c, dt):
        a = a.astype(dt)
        if a.shape != (r, c):
            a = jnp.pad(a, ((0, r - a.shape[0]), (0, c - a.shape[1])))
        return a

    x_p = pad2(x, B_p, D_in_p, cdt)
    w1_p = pad2(w1, D_in_p, H1_p, cdt)
    w2_p = pad2(w2, H1_p, H2_p, cdt)
    b1_p = pad2(b1.reshape(1, -1), 1, H1_p, jnp.float32)
    b2_p = pad2(b2.reshape(1, -1), 1, H2_p, jnp.float32)

    itm = cdt.itemsize
    out_itm = jnp.dtype(out_dtype).itemsize

    # Cost hint for XLA's scheduler.
    cost = pl.CostEstimate(
        flops=2 * B_p * (D_in_p * H1_p + H1_p * H2_p),
        transcendentals=(B_p * (H1_p + H2_p)) if activation in ("tanh", "sigmoid") else 0,
        bytes_accessed=(B_p * D_in_p * itm + D_in_p * H1_p * itm + H1_p * H2_p * itm
                        + (H1_p + H2_p) * 4 + B_p * H2_p * out_itm),
    )

    # VMEM plan: double-buffered x/out tiles + resident weights/biases + h
    # scratch. Raise the scoped limit only as needed; cap at 48 MiB so the same
    # config fits v7x's 64 MiB physical VMEM per TensorCore with headroom.
    vmem_needed = (2 * tb * D_in_p * itm
                   + 2 * tb * H2_p * out_itm
                   + 2 * (D_in_p * H1_p + H1_p * H2_p) * itm
                   + 2 * (H1_p + H2_p) * 4
                   + tb * H1_p * itm)
    vmem_limit = int(min(max(2 * vmem_needed, 32 << 20), 48 << 20))

    grid = (B_p // tb,)
    kernel = functools.partial(_mlp_kernel, act_fn=act_fn)

    out_p = pl.pallas_call(
        kernel,
        out_shape=jax.ShapeDtypeStruct((B_p, H2_p), out_dtype),
        grid_spec=pltpu.PrefetchScalarGridSpec(
            num_scalar_prefetch=0,
            grid=grid,
            in_specs=[
                pl.BlockSpec((tb, D_in_p), lambda i: (i, 0)),     # x tile (streams)
                pl.BlockSpec((D_in_p, H1_p), lambda i: (0, 0)),   # W1 (resident)
                pl.BlockSpec((1, H1_p), lambda i: (0, 0)),        # b1 (resident)
                pl.BlockSpec((H1_p, H2_p), lambda i: (0, 0)),     # W2 (resident)
                pl.BlockSpec((1, H2_p), lambda i: (0, 0)),        # b2 (resident)
            ],
            out_specs=pl.BlockSpec((tb, H2_p), lambda i: (i, 0)),
            scratch_shapes=[pltpu.VMEM((tb, H1_p), cdt)],
        ),
        compiler_params=pltpu.CompilerParams(
            dimension_semantics=("parallel",),   # batch tiles shard across TCs
            vmem_limit_bytes=vmem_limit,
        ),
        cost_estimate=cost,
    )(x_p, w1_p, b1_p, w2_p, b2_p)

    return out_p[:B, :H2]


if __name__ == "__main__":
    # Small shapes consistent with MLP(input_dim=32, hidden_dims=(128, 128),
    # activation='tanh').
    B, D_in = 8, 32
    H1, H2 = 128, 128

    key = jax.random.PRNGKey(0)
    kx, kw1, kb1, kw2, kb2 = jax.random.split(key, 5)

    x = jax.random.normal(kx, (B, D_in), dtype=jnp.float32)
    bound1 = 1.0 / jnp.sqrt(D_in)
    bound2 = 1.0 / jnp.sqrt(H1)
    w1 = jax.random.uniform(kw1, (D_in, H1), jnp.float32, -bound1, bound1)
    b1 = jax.random.uniform(kb1, (H1,), jnp.float32, -bound1, bound1)
    w2 = jax.random.uniform(kw2, (H1, H2), jnp.float32, -bound2, bound2)
    b2 = jax.random.uniform(kb2, (H2,), jnp.float32, -bound2, bound2)

    # Plain-JAX reference (exact PyTorch forward semantics).
    ref = jnp.tanh(jnp.tanh(x @ w1 + b1) @ w2 + b2)

    # f32 path: exact module semantics, tight tolerance.
    out_f32 = jax.block_until_ready(
        mlp_forward(x, w1, b1, w2, b2, compute_dtype=jnp.float32))
    assert out_f32.shape == (B, H2)
    assert jnp.allclose(out_f32, ref, atol=1e-5, rtol=1e-5)

    # bf16-operand fast path (f32 accumulation, f32 bias/activation): tolerance
    # reflects bf16 operand rounding only.
    out_bf16 = jax.block_until_ready(
        mlp_forward(x, w1, b1, w2, b2, compute_dtype=jnp.bfloat16))
    assert out_bf16.shape == (B, H2)
    assert jnp.allclose(out_bf16, ref, atol=3e-2, rtol=3e-2)

    print("KERNEL_OK")
</pallas_src>

<mosaic_0001>
module attributes {stable_mosaic.version = 11 : i64} {
  func.func @_mlp_kernel(%arg0: i32, %arg1: memref<8x128xf32, #tpu.memory_space<vmem>>, %arg2: memref<128x128xf32, #tpu.memory_space<vmem>>, %arg3: memref<1x128xf32, #tpu.memory_space<vmem>>, %arg4: memref<128x128xf32, #tpu.memory_space<vmem>>, %arg5: memref<1x128xf32, #tpu.memory_space<vmem>>, %arg6: memref<8x128xf32, #tpu.memory_space<vmem>>, %arg7: memref<8x128xf32, #tpu.memory_space<vmem>>) attributes {dimension_semantics = [#tpu.dimension_semantics<parallel>], iteration_bounds = array<i64: 1>, scalar_prefetch = 0 : i64, scratch_operands = 1 : i64, tpu.core_type = #tpu.core_type<tc>, window_params = [{transform_indices = @transform_0, window_bounds = array<i64: 8, 128>}, {pipeline_mode = #tpu.pipeline_mode<synchronous>, transform_indices = @transform_1, window_bounds = array<i64: 128, 128>}, {pipeline_mode = #tpu.pipeline_mode<synchronous>, transform_indices = @transform_2, window_bounds = array<i64: 1, 128>}, {pipeline_mode = #tpu.pipeline_mode<synchronous>, transform_indices = @transform_3, window_bounds = array<i64: 128, 128>}, {pipeline_mode = #tpu.pipeline_mode<synchronous>, transform_indices = @transform_4, window_bounds = array<i64: 1, 128>}, {transform_indices = @transform_5, window_bounds = array<i64: 8, 128>}]} {
    %c0 = arith.constant 0 : index
    %c0_0 = arith.constant 0 : index
    %0 = vector.load %arg1[%c0, %c0_0] : memref<8x128xf32, #tpu.memory_space<vmem>>, vector<8x128xf32>
    %c0_1 = arith.constant 0 : index
    %c0_2 = arith.constant 0 : index
    %1 = vector.load %arg2[%c0_1, %c0_2] : memref<128x128xf32, #tpu.memory_space<vmem>>, vector<128x128xf32>
    %cst = arith.constant dense<0.000000e+00> : vector<8x128xf32>
    %2 = tpu.matmul %0, %1, %cst {dimension_numbers = #tpu.dot_dimension_numbers<[1], [0], [0], [1], [0, 0, 1, 1], [], []>} : vector<8x128xf32>, vector<128x128xf32>, vector<8x128xf32> -> vector<8x128xf32>
    %c0_3 = arith.constant 0 : index
    %c0_4 = arith.constant 0 : index
    %3 = vector.load %arg3[%c0_3, %c0_4] : memref<1x128xf32, #tpu.memory_space<vmem>>, vector<1x128xf32>
    %4 = vector.broadcast %3 : vector<1x128xf32> to vector<8x128xf32>
    %5 = arith.addf %2, %4 : vector<8x128xf32>
    %6 = math.tanh %5 : vector<8x128xf32>
    %c0_5 = arith.constant 0 : index
    %c0_6 = arith.constant 0 : index
    %7 = vector.load %arg7[%c0_5, %c0_6] : memref<8x128xf32, #tpu.memory_space<vmem>>, vector<8x128xf32>
    tpu.vector_store %arg7[%c0_5, %c0_6], %6 {strides = array<i32>} : memref<8x128xf32, #tpu.memory_space<vmem>>, vector<8x128xf32>,
    %c0_7 = arith.constant 0 : index
    %c0_8 = arith.constant 0 : index
    %8 = vector.load %arg7[%c0_7, %c0_8] : memref<8x128xf32, #tpu.memory_space<vmem>>, vector<8x128xf32>
    %c0_9 = arith.constant 0 : index
    %c0_10 = arith.constant 0 : index
    %9 = vector.load %arg4[%c0_9, %c0_10] : memref<128x128xf32, #tpu.memory_space<vmem>>, vector<128x128xf32>
    %cst_11 = arith.constant dense<0.000000e+00> : vector<8x128xf32>
    %10 = tpu.matmul %8, %9, %cst_11 {dimension_numbers = #tpu.dot_dimension_numbers<[1], [0], [0], [1], [0, 0, 1, 1], [], []>} : vector<8x128xf32>, vector<128x128xf32>, vector<8x128xf32> -> vector<8x128xf32>
    %c0_12 = arith.constant 0 : index
    %c0_13 = arith.constant 0 : index
    %11 = vector.load %arg5[%c0_12, %c0_13] : memref<1x128xf32, #tpu.memory_space<vmem>>, vector<1x128xf32>
    %12 = vector.broadcast %11 : vector<1x128xf32> to vector<8x128xf32>
    %13 = arith.addf %10, %12 : vector<8x128xf32>
    %14 = math.tanh %13 : vector<8x128xf32>
    %c0_14 = arith.constant 0 : index
    %c0_15 = arith.constant 0 : index
    %15 = vector.load %arg6[%c0_14, %c0_15] : memref<8x128xf32, #tpu.memory_space<vmem>>, vector<8x128xf32>
    tpu.vector_store %arg6[%c0_14, %c0_15], %14 {strides = array<i32>} : memref<8x128xf32, #tpu.memory_space<vmem>>, vector<8x128xf32>,
    return
  }
  func.func @transform_0(%arg0: i32) -> (i32, i32) {
    %c0_i32 = arith.constant 0 : i32
    %c0_i32_0 = arith.constant 0 : i32
    return %arg0, %c0_i32 : i32, i32
  }
  func.func @transform_1(%arg0: i32) -> (i32, i32) {
    %c0_i32 = arith.constant 0 : i32
    %c0_i32_0 = arith.constant 0 : i32
    %c0_i32_1 = arith.constant 0 : i32
    return %c0_i32, %c0_i32_0 : i32, i32
  }
  func.func @transform_2(%arg0: i32) -> (i32, i32) {
    %c0_i32 = arith.constant 0 : i32
    %c0_i32_0 = arith.constant 0 : i32
    %c0_i32_1 = arith.constant 0 : i32
    return %c0_i32, %c0_i32_0 : i32, i32
  }
  func.func @transform_3(%arg0: i32) -> (i32, i32) {
    %c0_i32 = arith.constant 0 : i32
    %c0_i32_0 = arith.constant 0 : i32
    %c0_i32_1 = arith.constant 0 : i32
    return %c0_i32, %c0_i32_0 : i32, i32
  }
  func.func @transform_4(%arg0: i32) -> (i32, i32) {
    %c0_i32 = arith.constant 0 : i32
    %c0_i32_0 = arith.constant 0 : i32
    %c0_i32_1 = arith.constant 0 : i32
    return %c0_i32, %c0_i32_0 : i32, i32
  }
  func.func @transform_5(%arg0: i32) -> (i32, i32) {
    %c0_i32 = arith.constant 0 : i32
    %c0_i32_0 = arith.constant 0 : i32
    return %arg0, %c0_i32 : i32, i32
  }
}

</mosaic_0001>

<bundles_post_ra>
// kernel: tpu_custom_call.1
= control target key start
LH: loop header
LB: loop body
LE: loop exit
PB: predicated region body
PF: predicated region fallthrough
CT: control target
= control target key end

     0   :  { %10 = vsyncpa [#allocation4], 0  ;;  %s338_s0 = inlined_call_operand.hbm [shape: f32[8,128], index: 0, kind: input, shape index: {}]   ;;  %s339_s1 = inlined_call_operand.hbm [shape: f32[128,128], index: 1, kind: input, shape index: {}]   ;;  %s340_s2 = inlined_call_operand.vmem [shape: f32[1,128], index: 2, kind: input, shape index: {}]   ;;  %s341_s3 = inlined_call_operand.hbm [shape: f32[128,128], index: 3, kind: input, shape index: {}]   ;;  %s342_s4 = inlined_call_operand.vmem [shape: f32[1,128], index: 4, kind: input, shape index: {}]   ;;  %s343_s5 = inlined_call_operand.hbm [shape: f32[8,128], index: 5, kind: output, shape index: {}]  }
   0x1   :  { %11 = vsyncpa [#allocation7], 0  ;;  %s28_s20 = sshll.u32 %s339_s1, 4  ;;  %s29_s20 = int_to_ptr.hbm [resolvable:$true] %s28_s20 }
   0x2   :  { %12 = vsyncpa [#allocation5], 0  ;;  %s284_s21 = smov [#allocation6]   ;;  %s18_s25 = sshll.u32 %s338_s0, 4  ;;  %s19_s25 = int_to_ptr.hbm [resolvable:$true] %s18_s25 }
   0x3   :  { %s30_s22 = sshll.u32 %s284_s21, 4  ;;  %s285_s26 = smov 128   ;;  %s31_s22 = int_to_ptr.vmem [resolvable:$true] %s30_s22 }
   0x4   :  { %s286_s27 = smov 8   ;;  %s287_s28 = smov [#allocation3]  }
   0x5   :  { %36 = dma.hbm_to_vmem [thread:$0]  %s29_s20, 2048, %s31_s22, [#allocation7], %s285_s26, %s285_s26, %s286_s27  }
   0x6   :  { %s20_s29 = sshll.u32 %s287_s28, 4  ;;  %s43_s7 = sshll.u32 %s341_s3, 4  ;;  %s21_s29 = int_to_ptr.vmem [resolvable:$true] %s20_s29  ;;  %s44_s7 = int_to_ptr.hbm [resolvable:$true] %s43_s7 }
   0x7   :  { %23 = dma.hbm_to_vmem [thread:$0]  %s19_s25, 128, %s21_s29, [#allocation4]  }
   0x8   :  { %s288_s1 = smov [#allocation8]  }
   0x9   :  { %s45_s8 = sshll.u32 %s288_s1, 4  ;;  %s46_s8 = int_to_ptr.vmem [resolvable:$true] %s45_s8 }
   0xa   :  { %51 = dma.hbm_to_vmem [thread:$0]  %s44_s7, 2048, %s46_s8, [#allocation7], %s285_s26, %s285_s26, %s286_s27  }
   0xb   :  { %278 = dma.done.wait [#allocation4], 128  }
   0xc   :  { %279 = vsyncadd [#allocation4], 4294967168 }
   0xd   :  { %280 = dma.done.wait [#allocation7], 4096  }
   0xe   :  { %281 = vsyncadd [#allocation7], 4294963200  ;;  %v82_v0 = vld [vmem:[#allocation6 + $0x78] sm:$0xff]  ;;  %v81_v1 = vld [vmem:[#allocation6 + $0x70] sm:$0xff]  ;;  %s289_s11 = smov [#allocation9]   ;;  %s159_s15 = sshll.u32 %s343_s5, 4  ;;  %s160_s15 = int_to_ptr.hbm [resolvable:$true] %s159_s15 }
   0xf   :  { %87 = vmatpush.msra.mxu0 %v82_v0  ;;  %v80_v2 = vld [vmem:[#allocation6 + $0x68] sm:$0xff]  ;;  %v79_v3 = vld [vmem:[#allocation6 + $0x60] sm:$0xff]  ;;  %v125_v4 = vld [vmem:[#allocation8 + $0x78] sm:$0xff]  ;;  %s157_s12 = sshll.u32 %s289_s11, 4  ;;  %s158_s12 = int_to_ptr.vmem [resolvable:$true] %s157_s12 }
  0x10   :  { %v78_v5 = vld [vmem:[#allocation6 + $0x58] sm:$0xff]  ;;  %130 = vmatpush.msra.mxu1 %v125_v4  ;;  %v124_v6 = vld [vmem:[#allocation8 + $0x70] sm:$0xff]  ;;  %v123_v7 = vld [vmem:[#allocation8 + $0x68] sm:$0xff] }
  0x11   :  { %88 = vmatpush.msra.mxu0 %v81_v1  ;;  %v77_v8 = vld [vmem:[#allocation6 + $0x50] sm:$0xff]  ;;  %v122_v9 = vld [vmem:[#allocation8 + $0x60] sm:$0xff]  ;;  %v76_v10 = vld [vmem:[#allocation6 + $0x48] sm:$0xff] }
  0x12   :  { %131 = vmatpush.msra.mxu1 %v124_v6  ;;  %v121_v11 = vld [vmem:[#allocation8 + $0x58] sm:$0xff]  ;;  %v75_v12 = vld [vmem:[#allocation6 + $0x40] sm:$0xff]  ;;  %v120_v13 = vld [vmem:[#allocation8 + $0x50] sm:$0xff] }
  0x13   :  { %89 = vmatpush.msra.mxu0 %v80_v2  ;;  %v74_v14 = vld [vmem:[#allocation6 + $0x38] sm:$0xff]  ;;  %v119_v15 = vld [vmem:[#allocation8 + $0x48] sm:$0xff]  ;;  %v73_v16 = vld [vmem:[#allocation6 + $0x30] sm:$0xff] }
  0x14   :  { %132 = vmatpush.msra.mxu1 %v123_v7  ;;  %v118_v17 = vld [vmem:[#allocation8 + $0x40] sm:$0xff]  ;;  %v72_v18 = vld [vmem:[#allocation6 + $0x28] sm:$0xff]  ;;  %v117_v19 = vld [vmem:[#allocation8 + $0x38] sm:$0xff] }
  0x15   :  { %90 = vmatpush.msra.mxu0 %v79_v3  ;;  %v71_v20 = vld [vmem:[#allocation6 + $0x20] sm:$0xff]  ;;  %v116_v21 = vld [vmem:[#allocation8 + $0x30] sm:$0xff]  ;;  %v70_v22 = vld [vmem:[#allocation6 + $0x18] sm:$0xff] }
  0x16   :  { %133 = vmatpush.msra.mxu1 %v122_v9  ;;  %v115_v23 = vld [vmem:[#allocation8 + $0x28] sm:$0xff]  ;;  %v69_v24 = vld [vmem:[#allocation6 + $0x10] sm:$0xff]  ;;  %v67_v26 = vld [vmem:[#allocation6] sm:$0xff] }
  0x17   :  { %91 = vmatpush.msra.mxu0 %v78_v5  ;;  %v68_v25 = vld [vmem:[#allocation6 + $0x8] sm:$0xff]  ;;  %v66_v27 = vld [vmem:[#allocation3] sm:$0xff]  ;;  %v114_v28 = vld [vmem:[#allocation8 + $0x20] sm:$0xff] }
  0x18   :  { %134 = vmatpush.msra.mxu1 %v121_v11  ;;  %v113_v29 = vld [vmem:[#allocation8 + $0x18] sm:$0xff]  ;;  %v112_v30 = vld [vmem:[#allocation8 + $0x10] sm:$0xff]  ;;  %v111_v31 = vld [vmem:[#allocation8 + $0x8] sm:$0xff] }
  0x19   :  { %92 = vmatpush.msra.mxu0 %v77_v8  ;;  %v110_v32 = vld [vmem:[#allocation8] sm:$0xff]  ;;  %v176_v33 = vld [vmem:[%s340_s2] ss:$0 sm:$0xff] }
  0x1a   :  { %135 = vmatpush.msra.mxu1 %v120_v13  ;;  %v177_v37 = vld [vmem:[%s342_s4] ss:$0 sm:$0xff] }
  0x1b   :  { %93 = vmatpush.msra.mxu0 %v76_v10 }
  0x1c   :  { %136 = vmatpush.msra.mxu1 %v119_v15 }
  0x1d   :  { %94 = vmatpush.msra.mxu0 %v75_v12 }
  0x1e   :  { %137 = vmatpush.msra.mxu1 %v118_v17 }
  0x1f   :  { %95 = vmatpush.msra.mxu0 %v74_v14 }
  0x20   :  { %138 = vmatpush.msra.mxu1 %v117_v19 }
  0x21   :  { %96 = vmatpush.msra.mxu0 %v73_v16 }
  0x22   :  { %139 = vmatpush.msra.mxu1 %v116_v21 }
  0x23   :  { %97 = vmatpush.msra.mxu0 %v72_v18 }
  0x24   :  { %140 = vmatpush.msra.mxu1 %v115_v23 }
  0x25   :  { %98 = vmatpush.msra.mxu0 %v71_v20 }
  0x26   :  { %141 = vmatpush.msra.mxu1 %v114_v28 }
  0x27   :  { %99 = vmatpush.msra.mxu0 %v70_v22 }
  0x28   :  { %142 = vmatpush.msra.mxu1 %v113_v29 }
  0x29   :  { %100 = vmatpush.msra.mxu0 %v69_v24 }
  0x2a   :  { %143 = vmatpush.msra.mxu1 %v112_v30 }
  0x2b   :  { %101 = vmatpush.msra.mxu0 %v68_v25 }
  0x2c   :  { %144 = vmatpush.msra.mxu1 %v111_v31 }
  0x2d   :  { %102 = vmatpush.msra.mxu0 %v67_v26 }
  0x2e   :  { %103 = vmatmul.f32.vlgmr.msra.gmra.mxu0 %v66_v27  ;;  %145 = vmatpush.msra.mxu1 %v110_v32 }
  0xab   :  { %v104_v34 = vpop.f32.mrf.mxu0 }
  0xac   :  { %v105_v35 = vadd.f32 %v176_v33, %v104_v34 }
  0xae   :  { %178 = vtanh.f32 %v105_v35 }
  0xb4   :  { %v179_v36 = vpop.eup %178 }
  0xb5   :  { %146 = vmatmul.f32.vlgmr.msra.gmra.mxu1 %v179_v36 }
 0x132   :  { %v147_v38 = vpop.f32.mrf.mxu1 }
 0x133   :  { %v148_v39 = vadd.f32 %v177_v37, %v147_v38 }
 0x135   :  { %180 = vtanh.f32 %v148_v39 }
 0x13b   :  { %v181_v40 = vpop.eup %180 }
 0x13c   :  { %151 = vst [vmem:[#allocation9] sm:$0xff] %v181_v40 }
 0x13d   :  { %162 = dma.vmem_to_hbm [thread:$0]  %s158_s12, 128, %s160_s15, [#allocation5]  }
 0x13e   :  { %282 = dma.done.wait [#allocation5], 128  }
 0x13f   :  { %283 = vsyncadd [#allocation5], 4294967168 }
 0x140   :  { %167 = vsyncpa [#allocation4], 1 }
 0x141   :  { %168 = vsyncpa [#allocation7], 1 }
 0x142   :  { %169 = vsyncpa [#allocation5], 1 }

</bundles_post_ra>
